<compile_context>
chip_gen: v5e
topology: v5e:2x2
jax: 0.10.0
libtpu: 0.0.40
codegen_flags: <defaults>
</compile_context>

<pallas_src>
import math
import functools

import jax
import jax.numpy as jnp
from jax.experimental import pallas as pl
from jax.experimental.pallas import tpu as pltpu


def _round_up(x, m):
    return ((x + m - 1) // m) * m


def _ffn_kernel(x_ref, w1_ref, b1_ref, w2_ref, b2_ref, o_ref, acc_ref):
    # x_ref:  (TM, Dp)      w1_ref: (Dp, TH)    b1_ref: (1, TH)
    # w2_ref: (TH, Dp)      b2_ref: (1, Dp)
    # o_ref:  (TM, Dp)      acc_ref: (TM, Dp) f32 scratch accumulator
    h_idx = pl.program_id(1)

    @pl.when(h_idx == 0)
    def _():
        acc_ref[...] = jnp.zeros_like(acc_ref)

    x = x_ref[...]

    # First linear for this hidden slab (MXU, f32 accumulation) + bias slab.
    h = jnp.dot(x.astype(w1_ref.dtype), w1_ref[...],
                preferred_element_type=jnp.float32)
    h = h + b1_ref[...].astype(jnp.float32)

    # tanh-GELU (matches the PyTorch GELU module exactly), kept in f32.
    c = jnp.float32(math.sqrt(2.0 / math.pi))
    h = 0.5 * h * (1.0 + jnp.tanh(c * (h + 0.044715 * h * h * h)))

    # Second linear: partial reduction over this hidden slab into the f32
    # VMEM accumulator.
    acc_ref[...] += jnp.dot(h.astype(w2_ref.dtype), w2_ref[...],
                            preferred_element_type=jnp.float32)

    @pl.when(h_idx == pl.num_programs(1) - 1)
    def _():
        o_ref[...] = (acc_ref[...] + b2_ref[...].astype(jnp.float32)
                      ).astype(o_ref.dtype)


@functools.partial(jax.jit, static_argnames=("block_m", "block_h"))
def feed_forward(x, w1, b1, w2, b2, *, block_m=256, block_h=512):
    """x: (B, S, D). w1: (D, H), b1: (1, H), w2: (H, D), b2: (1, D).

    Returns (B, S, D) in x.dtype. Pass bf16 weights (and optionally bf16 x) for
    the fast MXU / low-HBM-traffic path; accumulation, bias add and GELU are
    always f32 inside the kernel.
    """
    B, S, D = x.shape
    H = w1.shape[1]
    M = B * S

    # Lane-dense padding: D and H up to multiples of 128 (unmasked stores,
    # full-width MXU passes). Zero padding keeps the math exact: padded hidden
    # columns give GELU(0 + 0) = 0 and hit zero rows of W2; padded D columns of
    # x hit zero rows of W1 and the padded output columns are sliced off.
    Dp = _round_up(D, 128)
    Hp = _round_up(H, 128)

    # Token tile: sublane packing (16 rows for 2-byte dtypes, 8 for f32),
    # 256-aligned when large (v6e/v7x MXU is 2x256x256; harmless on v5e).
    sub = 16 if jnp.dtype(x.dtype).itemsize == 2 else 8
    tm = _round_up(max(1, min(block_m, M)), sub)
    if tm >= 256:
        tm = _round_up(tm, 256)
    Mp = _round_up(M, tm)

    # Hidden tile: largest multiple of 128 that divides Hp, is <= block_h, and
    # keeps the per-core working set inside a v7x-safe ~48 MiB budget.
    xsz = jnp.dtype(x.dtype).itemsize
    wsz = jnp.dtype(w1.dtype).itemsize
    bsz = jnp.dtype(b1.dtype).itemsize
    budget = 48 * 1024 * 1024

    def _footprint(th_):
        return (2 * tm * Dp * xsz            # x tiles, double-buffered
                + 2 * tm * Dp * xsz          # out tiles, double-buffered
                + 2 * 2 * Dp * th_ * wsz     # W1 + W2 slabs, double-buffered
                + tm * Dp * 4                # f32 accumulator scratch
                + 8 * (th_ + Dp) * bsz)      # bias blocks (generous)

    th = 128
    for cand in range(128, min(_round_up(block_h, 128), Hp) + 1, 128):
        if Hp % cand == 0 and _footprint(cand) <= budget:
            th = cand

    vmem_limit = int(min(budget,
                         max(32 * 1024 * 1024, _footprint(th) + 8 * 1024 * 1024)))

    # Pad operands.
    x2d = x.reshape(M, D)
    if Mp != M or Dp != D:
        x2d = jnp.pad(x2d, ((0, Mp - M), (0, Dp - D)))
    w1p = jnp.pad(w1, ((0, Dp - D), (0, Hp - H))) if (Dp != D or Hp != H) else w1
    b1p = jnp.pad(b1, ((0, 0), (0, Hp - H))) if Hp != H else b1
    w2p = jnp.pad(w2, ((0, Hp - H), (0, Dp - D))) if (Dp != D or Hp != H) else w2
    b2p = jnp.pad(b2, ((0, 0), (0, Dp - D))) if Dp != D else b2

    grid = (Mp // tm, Hp // th)   # H (reduction) last -> accumulator pattern.

    cost = pl.CostEstimate(
        flops=4 * Mp * Dp * Hp,                       # two matmuls
        transcendentals=Mp * Hp,                      # one tanh per hidden elem
        bytes_accessed=(2 * Mp * Dp * xsz             # x in + out
                        + (Mp // tm) * 2 * Dp * Hp * wsz   # weights re-read per M tile
                        + (Hp + Dp) * bsz),
    )

    out2d = pl.pallas_call(
        _ffn_kernel,
        out_shape=jax.ShapeDtypeStruct((Mp, Dp), x.dtype),
        grid=grid,
        in_specs=[
            # Activations: stream over M, stay resident across the H axis.
            pl.BlockSpec((tm, Dp), lambda i, h: (i, 0)),
            # W1 column slab / b1 slab / W2 row slab: stream over H.
            pl.BlockSpec((Dp, th), lambda i, h: (0, h)),
            pl.BlockSpec((1, th), lambda i, h: (0, h)),
            pl.BlockSpec((th, Dp), lambda i, h: (h, 0)),
            # b2: constant block (tiny), written into the output at the last H step.
            pl.BlockSpec((1, Dp), lambda i, h: (0, 0)),
        ],
        out_specs=pl.BlockSpec((tm, Dp), lambda i, h: (i, 0)),
        scratch_shapes=[pltpu.VMEM((tm, Dp), jnp.float32)],
        compiler_params=pltpu.CompilerParams(
            # M tiles are independent (shard across TCs on v7x); H is a reduction.
            dimension_semantics=("parallel", "arbitrary"),
            vmem_limit_bytes=vmem_limit,
        ),
        cost_estimate=cost,
    )(x2d, w1p, b1p, w2p, b2p)

    out2d = out2d[:M, :D]
    return out2d.reshape(B, S, D)


def _reference(x, w1, b1, w2, b2):
    hp = jax.lax.Precision.HIGHEST
    h = jnp.dot(x, w1, precision=hp) + b1
    c = math.sqrt(2.0 / math.pi)
    h = 0.5 * h * (1.0 + jnp.tanh(c * (h + 0.044715 * h ** 3)))
    return jnp.dot(h, w2, precision=hp) + b2


def _rand_params(key, D, H, dtype=jnp.float32):
    kw1, kb1, kw2, kb2 = jax.random.split(key, 4)
    lim1 = 1.0 / math.sqrt(D)
    lim2 = 1.0 / math.sqrt(H)
    w1 = jax.random.uniform(kw1, (D, H), dtype, -lim1, lim1)
    b1 = jax.random.uniform(kb1, (1, H), dtype, -lim1, lim1)
    w2 = jax.random.uniform(kw2, (H, D), dtype, -lim2, lim2)
    b2 = jax.random.uniform(kb2, (1, D), dtype, -lim2, lim2)
    return w1, b1, w2, b2


if __name__ == "__main__":
    # Small config consistent with the module: emb_dim=32 -> hidden=4*32=128.
    B, S, D = 2, 8, 32
    H = 4 * D

    key = jax.random.PRNGKey(0)
    kx, kp, kx2, kp2 = jax.random.split(key, 4)

    x = jax.random.normal(kx, (B, S, D), dtype=jnp.float32)
    w1, b1, w2, b2 = _rand_params(kp, D, H)

    out = jax.block_until_ready(feed_forward(x, w1, b1, w2, b2))
    ref = _reference(x.reshape(B * S, D), w1, b1, w2, b2).reshape(B, S, D)
    assert out.shape == (B, S, D)
    # Tolerance covers possible MXU f32 pass-count differences vs the XLA ref.
    assert jnp.allclose(out, ref, atol=5e-3, rtol=5e-3), \
        float(jnp.max(jnp.abs(out - ref)))

    # bf16-weight fast path (f32 accumulation inside the kernel), looser tol.
    out_bf16 = jax.block_until_ready(
        feed_forward(x, w1.astype(jnp.bfloat16), b1, w2.astype(jnp.bfloat16), b2))
    assert jnp.allclose(out_bf16, ref, atol=3e-2, rtol=3e-2)

    # Multi-tile grid check (2 M tiles x 2 H tiles) to exercise the streamed-H
    # accumulator (pl.when init/finalize) and the M-parallel axis.
    B2, S2, D2 = 2, 16, 128
    H2 = 4 * D2
    x2 = jax.random.normal(kx2, (B2, S2, D2), dtype=jnp.float32)
    w1b, b1b, w2b, b2b = _rand_params(kp2, D2, H2)
    out2 = jax.block_until_ready(
        feed_forward(x2, w1b, b1b, w2b, b2b, block_m=16, block_h=256))
    ref2 = _reference(x2.reshape(B2 * S2, D2), w1b, b1b, w2b, b2b).reshape(B2, S2, D2)
    assert jnp.allclose(out2, ref2, atol=5e-3, rtol=5e-3), \
        float(jnp.max(jnp.abs(out2 - ref2)))

    print("KERNEL_OK")
</pallas_src>

<mosaic_0001>
module attributes {stable_mosaic.version = 11 : i64} {
  func.func @_ffn_kernel(%arg0: i32, %arg1: i32, %arg2: memref<16x128xf32, #tpu.memory_space<vmem>>, %arg3: memref<128x128xf32, #tpu.memory_space<vmem>>, %arg4: memref<1x128xf32, #tpu.memory_space<vmem>>, %arg5: memref<128x128xf32, #tpu.memory_space<vmem>>, %arg6: memref<1x128xf32, #tpu.memory_space<vmem>>, %arg7: memref<16x128xf32, #tpu.memory_space<vmem>>, %arg8: memref<16x128xf32, #tpu.memory_space<vmem>>) attributes {dimension_semantics = [#tpu.dimension_semantics<parallel>, #tpu.dimension_semantics<arbitrary>], iteration_bounds = array<i64: 1, 1>, scalar_prefetch = 0 : i64, scratch_operands = 1 : i64, tpu.core_type = #tpu.core_type<tc>, window_params = [{transform_indices = @transform_0, window_bounds = array<i64: 16, 128>}, {transform_indices = @transform_1, window_bounds = array<i64: 128, 128>}, {transform_indices = @transform_2, window_bounds = array<i64: 1, 128>}, {transform_indices = @transform_3, window_bounds = array<i64: 128, 128>}, {pipeline_mode = #tpu.pipeline_mode<synchronous>, transform_indices = @transform_4, window_bounds = array<i64: 1, 128>}, {transform_indices = @transform_5, window_bounds = array<i64: 16, 128>}]} {
    %c0_i32 = arith.constant 0 : i32
    %0 = arith.cmpi eq, %arg1, %c0_i32 : i32
    %1 = arith.extui %0 : i1 to i32
    %c0_i32_0 = arith.constant 0 : i32
    %2 = arith.cmpi ne, %1, %c0_i32_0 : i32
    scf.if %2 {
      %cst_19 = arith.constant 0.000000e+00 : f32
      %30 = vector.broadcast %cst_19 : f32 to vector<16x128xf32>
      %c0_20 = arith.constant 0 : index
      %c0_21 = arith.constant 0 : index
      %31 = vector.load %arg8[%c0_20, %c0_21] : memref<16x128xf32, #tpu.memory_space<vmem>>, vector<16x128xf32>
      tpu.vector_store %arg8[%c0_20, %c0_21], %30 {strides = array<i32>} : memref<16x128xf32, #tpu.memory_space<vmem>>, vector<16x128xf32>,
    } else {
    }
    %c0 = arith.constant 0 : index
    %c0_1 = arith.constant 0 : index
    %3 = vector.load %arg2[%c0, %c0_1] : memref<16x128xf32, #tpu.memory_space<vmem>>, vector<16x128xf32>
    %c0_2 = arith.constant 0 : index
    %c0_3 = arith.constant 0 : index
    %4 = vector.load %arg3[%c0_2, %c0_3] : memref<128x128xf32, #tpu.memory_space<vmem>>, vector<128x128xf32>
    %cst = arith.constant dense<0.000000e+00> : vector<16x128xf32>
    %5 = tpu.matmul %3, %4, %cst {dimension_numbers = #tpu.dot_dimension_numbers<[1], [0], [0], [1], [0, 0, 1, 1], [], []>} : vector<16x128xf32>, vector<128x128xf32>, vector<16x128xf32> -> vector<16x128xf32>
    %c0_4 = arith.constant 0 : index
    %c0_5 = arith.constant 0 : index
    %6 = vector.load %arg4[%c0_4, %c0_5] : memref<1x128xf32, #tpu.memory_space<vmem>>, vector<1x128xf32>
    %7 = vector.broadcast %6 : vector<1x128xf32> to vector<16x128xf32>
    %8 = arith.addf %5, %7 : vector<16x128xf32>
    %cst_6 = arith.constant 5.000000e-01 : f32
    %9 = vector.broadcast %cst_6 : f32 to vector<16x128xf32>
    %10 = arith.mulf %9, %8 : vector<16x128xf32>
    %cst_7 = arith.constant 4.471500e-02 : f32
    %11 = vector.broadcast %cst_7 : f32 to vector<16x128xf32>
    %12 = arith.mulf %11, %8 : vector<16x128xf32>
    %13 = arith.mulf %12, %8 : vector<16x128xf32>
    %14 = arith.mulf %13, %8 : vector<16x128xf32>
    %15 = arith.addf %8, %14 : vector<16x128xf32>
    %cst_8 = arith.constant 0.797884583 : f32
    %16 = vector.broadcast %cst_8 : f32 to vector<16x128xf32>
    %17 = arith.mulf %16, %15 : vector<16x128xf32>
    %18 = math.tanh %17 : vector<16x128xf32>
    %cst_9 = arith.constant 1.000000e+00 : f32
    %19 = vector.broadcast %cst_9 : f32 to vector<16x128xf32>
    %20 = arith.addf %19, %18 : vector<16x128xf32>
    %21 = arith.mulf %10, %20 : vector<16x128xf32>
    %c0_10 = arith.constant 0 : index
    %c0_11 = arith.constant 0 : index
    %22 = vector.load %arg8[%c0_10, %c0_11] : memref<16x128xf32, #tpu.memory_space<vmem>>, vector<16x128xf32>
    %c0_12 = arith.constant 0 : index
    %c0_13 = arith.constant 0 : index
    %23 = vector.load %arg5[%c0_12, %c0_13] : memref<128x128xf32, #tpu.memory_space<vmem>>, vector<128x128xf32>
    %cst_14 = arith.constant dense<0.000000e+00> : vector<16x128xf32>
    %24 = tpu.matmul %21, %23, %cst_14 {dimension_numbers = #tpu.dot_dimension_numbers<[1], [0], [0], [1], [0, 0, 1, 1], [], []>} : vector<16x128xf32>, vector<128x128xf32>, vector<16x128xf32> -> vector<16x128xf32>
    %25 = arith.addf %22, %24 : vector<16x128xf32>
    %c0_15 = arith.constant 0 : index
    %c0_16 = arith.constant 0 : index
    %26 = vector.load %arg8[%c0_15, %c0_16] : memref<16x128xf32, #tpu.memory_space<vmem>>, vector<16x128xf32>
    tpu.vector_store %arg8[%c0_15, %c0_16], %25 {strides = array<i32>} : memref<16x128xf32, #tpu.memory_space<vmem>>, vector<16x128xf32>,
    %c0_i32_17 = arith.constant 0 : i32
    %27 = arith.cmpi eq, %arg1, %c0_i32_17 : i32
    %28 = arith.extui %27 : i1 to i32
    %c0_i32_18 = arith.constant 0 : i32
    %29 = arith.cmpi ne, %28, %c0_i32_18 : i32
    scf.if %29 {
      %c0_19 = arith.constant 0 : index
      %c0_20 = arith.constant 0 : index
      %30 = vector.load %arg8[%c0_19, %c0_20] : memref<16x128xf32, #tpu.memory_space<vmem>>, vector<16x128xf32>
      %c0_21 = arith.constant 0 : index
      %c0_22 = arith.constant 0 : index
      %31 = vector.load %arg6[%c0_21, %c0_22] : memref<1x128xf32, #tpu.memory_space<vmem>>, vector<1x128xf32>
      %32 = vector.broadcast %31 : vector<1x128xf32> to vector<16x128xf32>
      %33 = arith.addf %30, %32 : vector<16x128xf32>
      %c0_23 = arith.constant 0 : index
      %c0_24 = arith.constant 0 : index
      %34 = vector.load %arg7[%c0_23, %c0_24] : memref<16x128xf32, #tpu.memory_space<vmem>>, vector<16x128xf32>
      tpu.vector_store %arg7[%c0_23, %c0_24], %33 {strides = array<i32>} : memref<16x128xf32, #tpu.memory_space<vmem>>, vector<16x128xf32>,
    } else {
    }
    return
  }
  func.func @transform_0(%arg0: i32, %arg1: i32) -> (i32, i32) {
    %c0_i32 = arith.constant 0 : i32
    %c0_i32_0 = arith.constant 0 : i32
    return %arg0, %c0_i32 : i32, i32
  }
  func.func @transform_1(%arg0: i32, %arg1: i32) -> (i32, i32) {
    %c0_i32 = arith.constant 0 : i32
    %c0_i32_0 = arith.constant 0 : i32
    return %c0_i32, %arg1 : i32, i32
  }
  func.func @transform_2(%arg0: i32, %arg1: i32) -> (i32, i32) {
    %c0_i32 = arith.constant 0 : i32
    %c0_i32_0 = arith.constant 0 : i32
    return %c0_i32, %arg1 : i32, i32
  }
  func.func @transform_3(%arg0: i32, %arg1: i32) -> (i32, i32) {
    %c0_i32 = arith.constant 0 : i32
    %c0_i32_0 = arith.constant 0 : i32
    return %arg1, %c0_i32 : i32, i32
  }
  func.func @transform_4(%arg0: i32, %arg1: i32) -> (i32, i32) {
    %c0_i32 = arith.constant 0 : i32
    %c0_i32_0 = arith.constant 0 : i32
    %c0_i32_1 = arith.constant 0 : i32
    return %c0_i32, %c0_i32_0 : i32, i32
  }
  func.func @transform_5(%arg0: i32, %arg1: i32) -> (i32, i32) {
    %c0_i32 = arith.constant 0 : i32
    %c0_i32_0 = arith.constant 0 : i32
    return %arg0, %c0_i32 : i32, i32
  }
}

</mosaic_0001>

<bundles_post_ra>
// kernel: feed_forward.1
= control target key start
LH: loop header
LB: loop body
LE: loop exit
PB: predicated region body
PF: predicated region fallthrough
CT: control target
= control target key end

     0   :  { %s333_s1 = inlined_call_operand.vmem [shape: f32[128,128], index: 1, kind: input, shape index: {}]   ;;  %s334_s3 = inlined_call_operand.vmem [shape: f32[128,128], index: 3, kind: input, shape index: {}]   ;;  %s335_s2 = inlined_call_operand.vmem [shape: f32[1,128], index: 2, kind: input, shape index: {}]   ;;  %s336_s0 = inlined_call_operand.vmem [shape: f32[16,128], index: 0, kind: input, shape index: {}]   ;;  %s337_s4 = inlined_call_operand.vmem [shape: f32[1,128], index: 4, kind: input, shape index: {}]   ;;  %s338_s5 = inlined_call_operand.vmem [shape: f32[16,128], index: 5, kind: output, shape index: {}]  }
   0x1   :  { %v43_v0 = vld [vmem:[%s333_s1 + $0x78] sm:$0xff]  ;;  %v42_v1 = vld [vmem:[%s333_s1 + $0x70] sm:$0xff]  ;;  %v41_v2 = vld [vmem:[%s333_s1 + $0x68] sm:$0xff] }
   0x2   :  { %48 = vmatpush.msra.mxu0 %v43_v0  ;;  %151 = vmatpush.msra.mxu2 %v43_v0  ;;  %v40_v3 = vld [vmem:[%s333_s1 + $0x60] sm:$0xff]  ;;  %v39_v4 = vld [vmem:[%s333_s1 + $0x58] sm:$0xff]  ;;  %v105_v6 = vld [vmem:[%s334_s3 + $0x70] sm:$0xff] }
   0x3   :  { %v106_v5 = vld [vmem:[%s334_s3 + $0x78] sm:$0xff]  ;;  %v38_v7 = vld [vmem:[%s333_s1 + $0x50] sm:$0xff]  ;;  %v104_v8 = vld [vmem:[%s334_s3 + $0x68] sm:$0xff] }
   0x4   :  { %49 = vmatpush.msra.mxu0 %v42_v1  ;;  %152 = vmatpush.msra.mxu2 %v42_v1  ;;  %v37_v9 = vld [vmem:[%s333_s1 + $0x48] sm:$0xff]  ;;  %v103_v10 = vld [vmem:[%s334_s3 + $0x60] sm:$0xff]  ;;  %v35_v12 = vld [vmem:[%s333_s1 + $0x38] sm:$0xff] }
   0x5   :  { %107 = vmatpush.msra.mxu1 %v106_v5  ;;  %167 = vmatpush.msra.mxu3 %v106_v5  ;;  %v36_v11 = vld [vmem:[%s333_s1 + $0x40] sm:$0xff]  ;;  %v34_v13 = vld [vmem:[%s333_s1 + $0x30] sm:$0xff]  ;;  %v33_v14 = vld [vmem:[%s333_s1 + $0x28] sm:$0xff] }
   0x6   :  { %50 = vmatpush.msra.mxu0 %v41_v2  ;;  %153 = vmatpush.msra.mxu2 %v41_v2  ;;  %v32_v15 = vld [vmem:[%s333_s1 + $0x20] sm:$0xff]  ;;  %v31_v16 = vld [vmem:[%s333_s1 + $0x18] sm:$0xff]  ;;  %v30_v17 = vld [vmem:[%s333_s1 + $0x10] sm:$0xff] }
   0x7   :  { %108 = vmatpush.msra.mxu1 %v105_v6  ;;  %168 = vmatpush.msra.mxu3 %v105_v6  ;;  %v29_v18 = vld [vmem:[%s333_s1 + $0x8] sm:$0xff]  ;;  %v28_v19 = vld [vmem:[%s333_s1] sm:$0xff]  ;;  %v102_v22 = vld [vmem:[%s334_s3 + $0x58] sm:$0xff] }
   0x8   :  { %51 = vmatpush.msra.mxu0 %v40_v3  ;;  %154 = vmatpush.msra.mxu2 %v40_v3  ;;  %v26_v20 = vld [vmem:[%s336_s0] sm:$0xff]  ;;  %v27_v21 = vld [vmem:[%s336_s0 + $0x8] sm:$0xff]  ;;  %v101_v23 = vld [vmem:[%s334_s3 + $0x50] sm:$0xff] }
   0x9   :  { %109 = vmatpush.msra.mxu1 %v104_v8  ;;  %169 = vmatpush.msra.mxu3 %v104_v8  ;;  %v100_v24 = vld [vmem:[%s334_s3 + $0x48] sm:$0xff]  ;;  %v99_v25 = vld [vmem:[%s334_s3 + $0x40] sm:$0xff]  ;;  %v98_v26 = vld [vmem:[%s334_s3 + $0x38] sm:$0xff] }
   0xa   :  { %52 = vmatpush.msra.mxu0 %v39_v4  ;;  %155 = vmatpush.msra.mxu2 %v39_v4  ;;  %v97_v27 = vld [vmem:[%s334_s3 + $0x30] sm:$0xff]  ;;  %v96_v28 = vld [vmem:[%s334_s3 + $0x28] sm:$0xff]  ;;  %v95_v29 = vld [vmem:[%s334_s3 + $0x20] sm:$0xff] }
   0xb   :  { %110 = vmatpush.msra.mxu1 %v103_v10  ;;  %170 = vmatpush.msra.mxu3 %v103_v10  ;;  %v94_v30 = vld [vmem:[%s334_s3 + $0x18] sm:$0xff]  ;;  %v93_v31 = vld [vmem:[%s334_s3 + $0x10] sm:$0xff]  ;;  %v92_v32 = vld [vmem:[%s334_s3 + $0x8] sm:$0xff] }
   0xc   :  { %53 = vmatpush.msra.mxu0 %v38_v7  ;;  %156 = vmatpush.msra.mxu2 %v38_v7  ;;  %v91_v33 = vld [vmem:[%s334_s3] sm:$0xff] }
   0xd   :  { %111 = vmatpush.msra.mxu1 %v102_v22  ;;  %171 = vmatpush.msra.mxu3 %v102_v22  ;;  %v183_v34 = vld [vmem:[%s335_s2] ss:$0 sm:$0xff] }
   0xe   :  { %54 = vmatpush.msra.mxu0 %v37_v9  ;;  %157 = vmatpush.msra.mxu2 %v37_v9  ;;  %v184_v57 = vld [vmem:[%s337_s4] ss:$0 sm:$0xff] }
   0xf   :  { %112 = vmatpush.msra.mxu1 %v101_v23  ;;  %172 = vmatpush.msra.mxu3 %v101_v23 }
  0x10   :  { %55 = vmatpush.msra.mxu0 %v36_v11  ;;  %158 = vmatpush.msra.mxu2 %v36_v11 }
  0x11   :  { %113 = vmatpush.msra.mxu1 %v100_v24  ;;  %173 = vmatpush.msra.mxu3 %v100_v24 }
  0x12   :  { %56 = vmatpush.msra.mxu0 %v35_v12  ;;  %159 = vmatpush.msra.mxu2 %v35_v12 }
  0x13   :  { %114 = vmatpush.msra.mxu1 %v99_v25  ;;  %174 = vmatpush.msra.mxu3 %v99_v25 }
  0x14   :  { %57 = vmatpush.msra.mxu0 %v34_v13  ;;  %160 = vmatpush.msra.mxu2 %v34_v13 }
  0x15   :  { %115 = vmatpush.msra.mxu1 %v98_v26  ;;  %175 = vmatpush.msra.mxu3 %v98_v26 }
  0x16   :  { %58 = vmatpush.msra.mxu0 %v33_v14  ;;  %161 = vmatpush.msra.mxu2 %v33_v14 }
  0x17   :  { %116 = vmatpush.msra.mxu1 %v97_v27  ;;  %176 = vmatpush.msra.mxu3 %v97_v27 }
  0x18   :  { %59 = vmatpush.msra.mxu0 %v32_v15  ;;  %162 = vmatpush.msra.mxu2 %v32_v15 }
  0x19   :  { %117 = vmatpush.msra.mxu1 %v96_v28  ;;  %177 = vmatpush.msra.mxu3 %v96_v28 }
  0x1a   :  { %60 = vmatpush.msra.mxu0 %v31_v16  ;;  %163 = vmatpush.msra.mxu2 %v31_v16 }
  0x1b   :  { %118 = vmatpush.msra.mxu1 %v95_v29  ;;  %178 = vmatpush.msra.mxu3 %v95_v29 }
  0x1c   :  { %61 = vmatpush.msra.mxu0 %v30_v17  ;;  %164 = vmatpush.msra.mxu2 %v30_v17 }
  0x1d   :  { %119 = vmatpush.msra.mxu1 %v94_v30  ;;  %179 = vmatpush.msra.mxu3 %v94_v30 }
  0x1e   :  { %62 = vmatpush.msra.mxu0 %v29_v18  ;;  %165 = vmatpush.msra.mxu2 %v29_v18 }
  0x1f   :  { %120 = vmatpush.msra.mxu1 %v93_v31  ;;  %180 = vmatpush.msra.mxu3 %v93_v31 }
  0x20   :  { %63 = vmatpush.msra.mxu0 %v28_v19  ;;  %166 = vmatpush.msra.mxu2 %v28_v19 }
  0x21   :  { %64 = vmatmul.f32.vlgmr.msra.gmra.mxu0 %v26_v20  ;;  %67 = vmatmul.f32.vlgmr.msra.gmra.mxu2 %v27_v21 }
  0x22   :  { %121 = vmatpush.msra.mxu1 %v92_v32  ;;  %181 = vmatpush.msra.mxu3 %v92_v32 }
  0x24   :  { %122 = vmatpush.msra.mxu1 %v91_v33  ;;  %182 = vmatpush.msra.mxu3 %v91_v33 }
  0x9e   :  { %v65_v35 = vpop.f32.mrf.mxu0 }
  0x9f   :  { %v66_v36 = vadd.f32 %v183_v34, %v65_v35 }
  0xa1   :  { %v73_v37 = vmul.f32 0.044715, %v66_v36  ;;  %v71_v50 = vmul.f32 0.5, %v66_v36 }
  0xa3   :  { %v75_v38 = vmul.f32 %v73_v37, %v66_v36 }
  0xa4   :  { %v68_v39 = vpop.f32.mrf.mxu2 }
  0xa5   :  { %v69_v40 = vadd.f32 %v183_v34, %v68_v39  ;;  %v77_v41 = vmul.f32 %v75_v38, %v66_v36 }
  0xa7   :  { %v79_v42 = vadd.f32 %v77_v41, %v66_v36  ;;  %v74_v43 = vmul.f32 0.044715, %v69_v40  ;;  %v72_v54 = vmul.f32 0.5, %v69_v40 }
  0xa9   :  { %v81_v44 = vmul.f32 0.7978846, %v79_v42  ;;  %v76_v45 = vmul.f32 %v74_v43, %v69_v40 }
  0xab   :  { %185 = vtanh.f32 %v81_v44  ;;  %v78_v46 = vmul.f32 %v76_v45, %v69_v40 }
  0xad   :  { %v80_v47 = vadd.f32 %v78_v46, %v69_v40 }
  0xaf   :  { %v82_v48 = vmul.f32 0.7978846, %v80_v47 }
  0xb1   :  { %v186_v49 = vpop.eup %185  ;;  %187 = vtanh.f32 %v82_v48 }
  0xb2   :  { %v85_v51 = vadd.f32 1.0, %v186_v49 }
  0xb4   :  { %v87_v52 = vmul.f32 %v85_v51, %v71_v50 }
  0xb6   :  { %123 = vmatmul.f32.vlgmr.msra.gmra.mxu1 %v87_v52 }
  0xb7   :  { %v188_v53 = vpop.eup %187 }
  0xb8   :  { %v86_v55 = vadd.f32 1.0, %v188_v53 }
  0xba   :  { %v88_v56 = vmul.f32 %v86_v55, %v72_v54 }
  0xbc   :  { %126 = vmatmul.f32.vlgmr.msra.gmra.mxu3 %v88_v56 }
 0x133   :  { %v124_v58 = vpop.f32.mrf.mxu1 }
 0x134   :  { %v143_v59 = vadd.f32 %v184_v57, %v124_v58 }
 0x136   :  { %145 = vst [vmem:[%s338_s5] sm:$0xff] %v143_v59 }
 0x13f   :  { %v127_v60 = vpop.f32.mrf.mxu3 }
 0x140   :  { %v144_v61 = vadd.f32 %v184_v57, %v127_v60 }
 0x142   :  { %146 = vst [vmem:[%s338_s5 + $0x8] sm:$0xff] %v144_v61 }

</bundles_post_ra>
